<compile_context>
chip_gen: v6e
topology: v6e:2x2x1
jax: 0.10.0
libtpu: 0.0.40
codegen_flags: <defaults>
</compile_context>

<pallas_src>
import jax
import jax.numpy as jnp
import numpy as np
from jax.experimental import pallas as pl
from jax.experimental.pallas import tpu as pltpu

LANE = 128      # lane width (last dim)
SUB = 8         # sublane granularity (second-to-last dim)
ROW_TILE = 256  # dst-row tile at real sizes (bounds resident VMEM; v7x 64 MiB safe)


def _round_up(x, m):
    return ((x + m - 1) // m) * m


def _pad2(x, rows, cols):
    return jnp.pad(x, ((0, rows - x.shape[0]), (0, cols - x.shape[1])))


def _choose_row_tile(nd):
    nd_p8 = _round_up(nd, SUB)
    return nd_p8 if nd_p8 <= ROW_TILE else ROW_TILE


# ----------------------------------------------------------------------------
# Fused Pallas kernel: per-dst-type, per dst-row tile i, per relation r
#   o  = X_dst[i] @ W_loop                        (at relation 0: init accumulator)
#   o += A_norm[r][i] @ (X_src[src[r]] @ W_e[r])  (every relation r)
#   o  = relu(o)                                  (at last relation)
# Output block is resident across the relation ("arbitrary") axis -> it IS the
# accumulator; no VMEM scratch needed.
# ----------------------------------------------------------------------------
def _fused_dst_kernel(src_idx_ref, a_ref, x_ref, w_ref, xd_ref, wl_ref, o_ref):
    del src_idx_ref  # consumed only by the index_maps (scalar prefetch)
    r = pl.program_id(1)

    @pl.when(r == 0)
    def _init():
        # Self-loop term doubles as the accumulator initializer.
        o_ref[...] = jnp.dot(xd_ref[...], wl_ref[...],
                             preferred_element_type=jnp.float32)

    # bf16 MXU matmuls, f32 accumulation.
    xw = jnp.dot(x_ref[...], w_ref[...], preferred_element_type=jnp.float32)
    o_ref[...] += jnp.dot(a_ref[...], xw.astype(jnp.bfloat16),
                          preferred_element_type=jnp.float32)

    @pl.when(r == pl.num_programs(1) - 1)
    def _finalize():
        o_ref[...] = jnp.maximum(o_ref[...], 0.0)


def fused_dst_forward(src_idx, a_stack, x_all, w_stack, x_dst, w_loop, tm):
    """src_idx: (R,) i32   per-relation index into x_all's leading axis
       a_stack: (R, nd_p, ns_p)   bf16 row-normalized adjacency (dst x src)
       x_all:   (T, ns_p, fin_p)  bf16 shared src-feature slabs (one per ntype)
       w_stack: (R, fin_p, hid_p) bf16 per-relation weights
       x_dst:   (nd_p, fin_p)     bf16 dst features (self-loop)
       w_loop:  (fin_p, hid_p)    bf16 self-loop weight
       -> (nd_p, hid_p) f32"""
    R, nd_p, ns_p = a_stack.shape
    fin_p = x_all.shape[2]
    hid_p = w_stack.shape[2]
    n_row_tiles = nd_p // tm

    flops = (2 * R * n_row_tiles * ns_p * fin_p * hid_p   # X_src @ W_e (per row tile)
             + 2 * R * nd_p * ns_p * hid_p                # A @ (XW)
             + 2 * n_row_tiles * tm * fin_p * hid_p)      # self-loop
    bytes_accessed = (a_stack.size + n_row_tiles * R * ns_p * fin_p
                      + w_stack.size + x_dst.size + w_loop.size) * 2 \
                     + nd_p * hid_p * 4
    cost = pl.CostEstimate(flops=int(flops), transcendentals=0,
                           bytes_accessed=int(bytes_accessed))

    grid_spec = pltpu.PrefetchScalarGridSpec(
        num_scalar_prefetch=1,
        grid=(n_row_tiles, R),
        in_specs=[
            # adjacency block for (row tile i, relation r)
            pl.BlockSpec((pl.Squeezed(), tm, ns_p),
                         lambda i, r, src: (r, i, 0)),
            # shared src features, selected per relation via scalar prefetch
            pl.BlockSpec((pl.Squeezed(), ns_p, fin_p),
                         lambda i, r, src: (src[r], 0, 0)),
            # per-relation weight
            pl.BlockSpec((pl.Squeezed(), fin_p, hid_p),
                         lambda i, r, src: (r, 0, 0)),
            # dst features / self-loop weight: resident across relations
            pl.BlockSpec((tm, fin_p), lambda i, r, src: (i, 0)),
            pl.BlockSpec((fin_p, hid_p), lambda i, r, src: (0, 0)),
        ],
        out_specs=pl.BlockSpec((tm, hid_p), lambda i, r, src: (i, 0)),
    )

    return pl.pallas_call(
        _fused_dst_kernel,
        out_shape=jax.ShapeDtypeStruct((nd_p, hid_p), jnp.float32),
        grid_spec=grid_spec,
        compiler_params=pltpu.CompilerParams(
            dimension_semantics=("parallel", "arbitrary")),
        cost_estimate=cost,
    )(src_idx, a_stack, x_all, w_stack, x_dst, w_loop)


# ----------------------------------------------------------------------------
# RGCN forward (wrapper: padding / stacking / dtype glue only)
# ----------------------------------------------------------------------------
def rgcn_forward(feat_dict, embed_tables, adj_norm, rel_weights, loop_weights,
                 canonical_etypes):
    # Embedding layers: feature of an embedded ntype = its full embedding table
    # (torch.arange(num_nodes) lookup).
    feats = dict(feat_dict)
    for ntype, table in embed_tables.items():
        feats[ntype] = table

    in_feats = next(iter(feats.values())).shape[1]
    hid = next(iter(rel_weights.values())).shape[1]
    fin_p = _round_up(in_feats, LANE)
    hid_p = _round_up(hid, LANE)

    n_nodes = {nt: x.shape[0] for nt, x in feats.items()}
    # Common padded src node count, padded to 128 lanes (A's last dim is both the
    # lane dim of its loads and the MXU K of A @ (XW)).
    ns_p = _round_up(max(n_nodes.values()), LANE)

    # One shared bf16 src-feature slab per node type (deduped across relations).
    src_types = sorted(feats.keys())
    src_index = {nt: i for i, nt in enumerate(src_types)}
    x_all = jnp.stack([_pad2(feats[nt], ns_p, fin_p) for nt in src_types]
                      ).astype(jnp.bfloat16)

    # Group relations by destination type.
    by_dst = {}
    for (srctype, etype, dsttype) in canonical_etypes:
        by_dst.setdefault(dsttype, []).append((srctype, etype))

    out = {}
    for dsttype, rels in by_dst.items():
        nd = n_nodes[dsttype]
        tm = _choose_row_tile(nd)
        nd_p = _round_up(nd, tm)

        src_idx = jnp.asarray([src_index[s] for (s, _) in rels], dtype=jnp.int32)
        a_stack = jnp.stack([_pad2(adj_norm[e], nd_p, ns_p) for (_, e) in rels]
                            ).astype(jnp.bfloat16)
        w_stack = jnp.stack([_pad2(rel_weights[e], fin_p, hid_p) for (_, e) in rels]
                            ).astype(jnp.bfloat16)
        x_dst = _pad2(feats[dsttype], nd_p, fin_p).astype(jnp.bfloat16)
        w_loop = _pad2(loop_weights[dsttype], fin_p, hid_p).astype(jnp.bfloat16)

        y = fused_dst_forward(src_idx, a_stack, x_all, w_stack, x_dst, w_loop, tm)
        out[dsttype] = y[:nd, :hid]
    return out


# ----------------------------------------------------------------------------
# Pure-JAX reference (f32, for correctness check)
# ----------------------------------------------------------------------------
def rgcn_reference(feat_dict, embed_tables, adj_norm, rel_weights, loop_weights,
                   canonical_etypes):
    feats = dict(feat_dict)
    for ntype, table in embed_tables.items():
        feats[ntype] = table
    msg_acc = {}
    for (srctype, etype, dsttype) in canonical_etypes:
        m = adj_norm[etype] @ (feats[srctype] @ rel_weights[etype])
        msg_acc[dsttype] = msg_acc.get(dsttype, 0.0) + m
    return {ntype: jax.nn.relu(msg + feats[ntype] @ loop_weights[ntype])
            for ntype, msg in msg_acc.items()}


# ----------------------------------------------------------------------------
# main
# ----------------------------------------------------------------------------
if __name__ == "__main__":
    key = jax.random.PRNGKey(0)

    # ACM-like heterogeneous graph (small, synthetic).
    n_paper, n_author, n_subject = 32, 24, 16
    in_feats, hidden_feats = 32, 32
    num_nodes = {"paper": n_paper, "author": n_author, "subject": n_subject}

    canonical_etypes = [
        ("paper",   "written-by", "author"),
        ("author",  "writing",    "paper"),
        ("paper",   "citing",     "paper"),
        ("paper",   "cited",      "paper"),
        ("paper",   "is-about",   "subject"),
        ("subject", "has",        "paper"),
    ]

    keys = jax.random.split(key, 16)

    # Binary adjacency (dst x src), with reverse relations as transposes.
    pa = (jax.random.uniform(keys[0], (n_author, n_paper)) < 0.3).astype(jnp.float32)
    pp = (jax.random.uniform(keys[1], (n_paper, n_paper)) < 0.2).astype(jnp.float32)
    ps = (jax.random.uniform(keys[2], (n_subject, n_paper)) < 0.3).astype(jnp.float32)
    adj = {
        "written-by": pa,          # paper   -> author
        "writing":    pa.T,        # author  -> paper
        "citing":     pp,          # paper   -> paper
        "cited":      pp.T,        # paper   -> paper
        "is-about":   ps,          # paper   -> subject
        "has":        ps.T,        # subject -> paper
    }
    # Row-normalize (mean aggregation over in-neighbors), guarding zero in-degree.
    adj_norm = {e: a / jnp.maximum(a.sum(axis=1, keepdims=True), 1.0)
                for e, a in adj.items()}

    # Input features: only "paper" comes with features; "author"/"subject" embedded.
    feat_dict = {"paper": jax.random.normal(keys[3], (n_paper, in_feats),
                                            dtype=jnp.float32)}
    embed_tables = {
        "author":  jax.random.normal(keys[4], (n_author, in_feats), dtype=jnp.float32),
        "subject": jax.random.normal(keys[5], (n_subject, in_feats), dtype=jnp.float32),
    }

    # Per-relation linear weights (bias=False) and per-ntype self-loop weights.
    rel_weights = {
        etype: 0.1 * jax.random.normal(k, (in_feats, hidden_feats), dtype=jnp.float32)
        for (_, etype, _), k in zip(canonical_etypes, jax.random.split(keys[6], 6))
    }
    loop_weights = {
        ntype: 0.1 * jax.random.normal(k, (in_feats, hidden_feats), dtype=jnp.float32)
        for ntype, k in zip(num_nodes.keys(), jax.random.split(keys[7], 3))
    }

    out = rgcn_forward(feat_dict, embed_tables, adj_norm, rel_weights,
                       loop_weights, canonical_etypes)
    out = jax.tree_util.tree_map(jax.block_until_ready, out)

    ref = rgcn_reference(feat_dict, embed_tables, adj_norm, rel_weights,
                         loop_weights, canonical_etypes)
    # bf16 MXU inputs with f32 accumulation -> loosened tolerance vs f32 reference.
    for ntype in out:
        np.testing.assert_allclose(np.asarray(out[ntype]), np.asarray(ref[ntype]),
                                   rtol=3e-2, atol=3e-2)

    print("KERNEL_OK")
</pallas_src>

<mosaic_0001>
module attributes {stable_mosaic.version = 11 : i64} {
  func.func @_fused_dst_kernel(%arg0: i32, %arg1: i32, %arg2: memref<1xi32, #tpu.memory_space<smem>>, %arg3: memref<1x24x128xbf16, #tpu.memory_space<vmem>>, %arg4: memref<1x128x128xbf16, #tpu.memory_space<vmem>>, %arg5: memref<1x128x128xbf16, #tpu.memory_space<vmem>>, %arg6: memref<24x128xbf16, #tpu.memory_space<vmem>>, %arg7: memref<128x128xbf16, #tpu.memory_space<vmem>>, %arg8: memref<24x128xf32, #tpu.memory_space<vmem>>) attributes {dimension_semantics = [#tpu.dimension_semantics<parallel>, #tpu.dimension_semantics<arbitrary>], iteration_bounds = array<i64: 1, 1>, scalar_prefetch = 1 : i64, scratch_operands = 0 : i64, tpu.core_type = #tpu.core_type<tc>, window_params = [{transform_indices = @transform_0, window_bounds = array<i64: 1, 24, 128>}, {transform_indices = @transform_1, window_bounds = array<i64: 1, 128, 128>}, {transform_indices = @transform_2, window_bounds = array<i64: 1, 128, 128>}, {transform_indices = @transform_3, window_bounds = array<i64: 24, 128>}, {pipeline_mode = #tpu.pipeline_mode<synchronous>, transform_indices = @transform_4, window_bounds = array<i64: 128, 128>}, {transform_indices = @transform_5, window_bounds = array<i64: 24, 128>}]} {
    %c0_i32 = arith.constant 0 : i32
    %0 = arith.cmpi eq, %arg1, %c0_i32 : i32
    %1 = arith.extui %0 : i1 to i32
    %c0_i32_0 = arith.constant 0 : i32
    %2 = arith.cmpi ne, %1, %c0_i32_0 : i32
    scf.if %2 {
      %c0_16 = arith.constant 0 : index
      %c0_17 = arith.constant 0 : index
      %18 = vector.load %arg6[%c0_16, %c0_17] : memref<24x128xbf16, #tpu.memory_space<vmem>>, vector<24x128xbf16>
      %c0_18 = arith.constant 0 : index
      %c0_19 = arith.constant 0 : index
      %19 = vector.load %arg7[%c0_18, %c0_19] : memref<128x128xbf16, #tpu.memory_space<vmem>>, vector<128x128xbf16>
      %cst_20 = arith.constant dense<0.000000e+00> : vector<24x128xf32>
      %20 = tpu.matmul %18, %19, %cst_20 {dimension_numbers = #tpu.dot_dimension_numbers<[1], [0], [0], [1], [0, 0, 1, 1], [], []>} : vector<24x128xbf16>, vector<128x128xbf16>, vector<24x128xf32> -> vector<24x128xf32>
      %c0_21 = arith.constant 0 : index
      %c0_22 = arith.constant 0 : index
      %21 = vector.load %arg8[%c0_21, %c0_22] : memref<24x128xf32, #tpu.memory_space<vmem>>, vector<24x128xf32>
      tpu.vector_store %arg8[%c0_21, %c0_22], %20 {strides = array<i32>} : memref<24x128xf32, #tpu.memory_space<vmem>>, vector<24x128xf32>,
    } else {
    }
    %c0 = arith.constant 0 : index
    %c0_1 = arith.constant 0 : index
    %c0_2 = arith.constant 0 : index
    %3 = vector.load %arg4[%c0, %c0_1, %c0_2] : memref<1x128x128xbf16, #tpu.memory_space<vmem>>, vector<1x128x128xbf16>
    %4 = vector.shape_cast %3 : vector<1x128x128xbf16> to vector<128x128xbf16>
    %c0_3 = arith.constant 0 : index
    %c0_4 = arith.constant 0 : index
    %c0_5 = arith.constant 0 : index
    %5 = vector.load %arg5[%c0_3, %c0_4, %c0_5] : memref<1x128x128xbf16, #tpu.memory_space<vmem>>, vector<1x128x128xbf16>
    %6 = vector.shape_cast %5 : vector<1x128x128xbf16> to vector<128x128xbf16>
    %cst = arith.constant dense<0.000000e+00> : vector<128x128xf32>
    %7 = tpu.matmul %4, %6, %cst {dimension_numbers = #tpu.dot_dimension_numbers<[1], [0], [0], [1], [0, 0, 1, 1], [], []>} : vector<128x128xbf16>, vector<128x128xbf16>, vector<128x128xf32> -> vector<128x128xf32>
    %c0_6 = arith.constant 0 : index
    %c0_7 = arith.constant 0 : index
    %8 = vector.load %arg8[%c0_6, %c0_7] : memref<24x128xf32, #tpu.memory_space<vmem>>, vector<24x128xf32>
    %c0_8 = arith.constant 0 : index
    %c0_9 = arith.constant 0 : index
    %c0_10 = arith.constant 0 : index
    %9 = vector.load %arg3[%c0_8, %c0_9, %c0_10] : memref<1x24x128xbf16, #tpu.memory_space<vmem>>, vector<1x24x128xbf16>
    %10 = vector.shape_cast %9 : vector<1x24x128xbf16> to vector<24x128xbf16>
    %11 = arith.truncf %7 : vector<128x128xf32> to vector<128x128xbf16>
    %cst_11 = arith.constant dense<0.000000e+00> : vector<24x128xf32>
    %12 = tpu.matmul %10, %11, %cst_11 {dimension_numbers = #tpu.dot_dimension_numbers<[1], [0], [0], [1], [0, 0, 1, 1], [], []>} : vector<24x128xbf16>, vector<128x128xbf16>, vector<24x128xf32> -> vector<24x128xf32>
    %13 = arith.addf %8, %12 : vector<24x128xf32>
    %c0_12 = arith.constant 0 : index
    %c0_13 = arith.constant 0 : index
    %14 = vector.load %arg8[%c0_12, %c0_13] : memref<24x128xf32, #tpu.memory_space<vmem>>, vector<24x128xf32>
    tpu.vector_store %arg8[%c0_12, %c0_13], %13 {strides = array<i32>} : memref<24x128xf32, #tpu.memory_space<vmem>>, vector<24x128xf32>,
    %c0_i32_14 = arith.constant 0 : i32
    %15 = arith.cmpi eq, %arg1, %c0_i32_14 : i32
    %16 = arith.extui %15 : i1 to i32
    %c0_i32_15 = arith.constant 0 : i32
    %17 = arith.cmpi ne, %16, %c0_i32_15 : i32
    scf.if %17 {
      %c0_16 = arith.constant 0 : index
      %c0_17 = arith.constant 0 : index
      %18 = vector.load %arg8[%c0_16, %c0_17] : memref<24x128xf32, #tpu.memory_space<vmem>>, vector<24x128xf32>
      %cst_18 = arith.constant 0.000000e+00 : f32
      %19 = vector.broadcast %cst_18 : f32 to vector<24x128xf32>
      %20 = arith.maximumf %18, %19 : vector<24x128xf32>
      %c0_19 = arith.constant 0 : index
      %c0_20 = arith.constant 0 : index
      %21 = vector.load %arg8[%c0_19, %c0_20] : memref<24x128xf32, #tpu.memory_space<vmem>>, vector<24x128xf32>
      tpu.vector_store %arg8[%c0_19, %c0_20], %20 {strides = array<i32>} : memref<24x128xf32, #tpu.memory_space<vmem>>, vector<24x128xf32>,
    } else {
    }
    return
  }
  func.func @transform_0(%arg0: i32, %arg1: i32, %arg2: memref<1xi32, #tpu.memory_space<smem>>) -> (i32, i32, i32) {
    %c0_i32 = arith.constant 0 : i32
    %c0_i32_0 = arith.constant 0 : i32
    return %arg1, %arg0, %c0_i32 : i32, i32, i32
  }
  func.func @transform_1(%arg0: i32, %arg1: i32, %arg2: memref<1xi32, #tpu.memory_space<smem>>) -> (i32, i32, i32) {
    %0 = arith.index_cast %arg1 : i32 to index
    %1 = memref.load %arg2[%0] : memref<1xi32, #tpu.memory_space<smem>>
    %c0_i32 = arith.constant 0 : i32
    %c0_i32_0 = arith.constant 0 : i32
    %c0_i32_1 = arith.constant 0 : i32
    return %1, %c0_i32, %c0_i32_0 : i32, i32, i32
  }
  func.func @transform_2(%arg0: i32, %arg1: i32, %arg2: memref<1xi32, #tpu.memory_space<smem>>) -> (i32, i32, i32) {
    %c0_i32 = arith.constant 0 : i32
    %c0_i32_0 = arith.constant 0 : i32
    %c0_i32_1 = arith.constant 0 : i32
    return %arg1, %c0_i32, %c0_i32_0 : i32, i32, i32
  }
  func.func @transform_3(%arg0: i32, %arg1: i32, %arg2: memref<1xi32, #tpu.memory_space<smem>>) -> (i32, i32) {
    %c0_i32 = arith.constant 0 : i32
    %c0_i32_0 = arith.constant 0 : i32
    return %arg0, %c0_i32 : i32, i32
  }
  func.func @transform_4(%arg0: i32, %arg1: i32, %arg2: memref<1xi32, #tpu.memory_space<smem>>) -> (i32, i32) {
    %c0_i32 = arith.constant 0 : i32
    %c0_i32_0 = arith.constant 0 : i32
    %c0_i32_1 = arith.constant 0 : i32
    return %c0_i32, %c0_i32_0 : i32, i32
  }
  func.func @transform_5(%arg0: i32, %arg1: i32, %arg2: memref<1xi32, #tpu.memory_space<smem>>) -> (i32, i32) {
    %c0_i32 = arith.constant 0 : i32
    %c0_i32_0 = arith.constant 0 : i32
    return %arg0, %c0_i32 : i32, i32
  }
}

</mosaic_0001>

<bundles_post_ra>
// kernel: tpu_custom_call.1
= control target key start
LH: loop header
LB: loop body
LE: loop exit
PB: predicated region body
PF: predicated region fallthrough
CT: control target
= control target key end

     0   :  { %12 = vsyncpa [#allocation5], 0  ;;  %s959_s0 = inlined_call_operand.<no memory space> [shape: s32[1], index: 0, kind: input, shape index: {}]   ;;  %s960_s1 = inlined_call_operand.hbm [shape: bf16[1,24,128], index: 1, kind: input, shape index: {}]   ;;  %s961_s2 = inlined_call_operand.hbm [shape: bf16[3,128,128], index: 2, kind: input, shape index: {}]   ;;  %s962_s3 = inlined_call_operand.hbm [shape: bf16[1,128,128], index: 3, kind: input, shape index: {}]   ;;  %s963_s4 = inlined_call_operand.hbm [shape: bf16[24,128], index: 4, kind: input, shape index: {}]   ;;  %s964_s5 = inlined_call_operand.hbm [shape: bf16[128,128], index: 5, kind: input, shape index: {}]   ;;  %s965_s6 = inlined_call_operand.hbm [shape: f32[24,128], index: 6, kind: output, shape index: {}]  }
   0x1   :  { %13 = vsyncpa [#allocation8], 0 }
   0x2   :  { %14 = vsyncpa [#allocation11], 0 }
   0x3   :  { %15 = vsyncpa [#allocation6], 0  ;;  %s595_s23 = sshll.u32 %s959_s0, 10  ;;  %s872_s27 = smov [#allocation7]  }
   0x4   :  { %s36_s26 = scalar_lea.hbm %s961_s2, %s595_s23  ;;  %s37_s28 = sshll.u32 %s872_s27, 4  ;;  %s38_s28 = int_to_ptr.vmem [resolvable:$true] %s37_s28 }
   0x5   :  { %s742_s29 = scalar_lea.hbm %s36_s26, 1024  ;;  %s744_s8 = scalar_lea.hbm %s961_s2, 3072 }
   0x6   :  { %p743_p0 = scmp.ne.s32.totalorder %s36_s26, %s742_s29  ;;  %p745_p1 = scmp.lt.s32.totalorder %s36_s26, %s961_s2 }
   0x7   :  { %p746_p2 = scmp.lt.s32.totalorder %s744_s8, %s742_s29 }
   0x9   :  { %p747_p3 = por %p746_p2, %p745_p1 }
   0xb   :  { %p748_p4 = pnand %p747_p3, %p743_p0 }
   0xd   :  { %751 = shalt.err (!%p748_p4)
}
   0xe   :  { %s752_s0 = scalar_lea.vmem %s38_s28, 1024  ;;  %p757_p6 = scmp.lt.s32.totalorder %s38_s28, %s38_s28 }
   0xf   :  { %p753_p5 = scmp.ne.s32.totalorder %s38_s28, %s752_s0  ;;  %p758_p7 = scmp.lt.s32.totalorder %s752_s0, %s752_s0 }
  0x11   :  { %p759_p8 = por %p758_p7, %p757_p6 }
  0x13   :  { %p760_p9 = pnand %p759_p8, %p753_p5 }
  0x15   :  { %763 = shalt.err (!%p760_p9)
}
  0x16   :  { %s873_s11 = smov 64   ;;  %s874_s12 = smov 4  }
  0x17   :  { %43 = dma.hbm_to_vmem [thread:$0]  %s36_s26, 1024, %s38_s28, [#allocation8], %s873_s11, %s873_s11, %s874_s12  }
  0x18   :  { %s875_s13 = smov [#allocation10]   ;;  %s876_s2 = smov [#allocation4]  }
  0x19   :  { %s61_s14 = sshll.u32 %s875_s13, 4  ;;  %s21_s15 = sshll.u32 %s876_s2, 4  ;;  %s62_s14 = int_to_ptr.vmem [resolvable:$true] %s61_s14  ;;  %s22_s15 = int_to_ptr.vmem [resolvable:$true] %s21_s15 }
  0x1a   :  { %s772_s16 = scalar_lea.vmem %s62_s14, 192  ;;  %p777_p11 = scmp.lt.s32.totalorder %s62_s14, %s62_s14 }
  0x1b   :  { %p773_p10 = scmp.ne.s32.totalorder %s62_s14, %s772_s16  ;;  %p778_p12 = scmp.lt.s32.totalorder %s772_s16, %s772_s16 }
  0x1d   :  { %p779_p13 = por %p778_p12, %p777_p11 }
  0x1f   :  { %p780_p0 = pnand %p779_p13, %p773_p10 }
  0x21   :  { %783 = shalt.err (!%p780_p0)
}
  0x22   :  { %67 = dma.hbm_to_vmem [thread:$0]  %s963_s4, 192, %s62_s14, [#allocation11], %s873_s11, %s873_s11, %s874_s12  }
  0x23   :  { %s792_s19 = scalar_lea.vmem %s22_s15, 192  ;;  %p797_p2 = scmp.lt.s32.totalorder %s22_s15, %s22_s15 }
  0x24   :  { %p793_p1 = scmp.ne.s32.totalorder %s22_s15, %s792_s19  ;;  %p798_p3 = scmp.lt.s32.totalorder %s792_s19, %s792_s19 }
  0x26   :  { %p799_p4 = por %p798_p3, %p797_p2 }
  0x28   :  { %p800_p5 = pnand %p799_p4, %p793_p1 }
  0x2a   :  { %803 = shalt.err (!%p800_p5)
}
  0x2b   :  { %27 = dma.hbm_to_vmem [thread:$0]  %s960_s1, 192, %s22_s15, [#allocation5], %s873_s11, %s873_s11, %s874_s12  }
  0x2c   :  { %s877_s22 = smov [#allocation9]   ;;  %s878_s24 = smov [#allocation12]  }
  0x2d   :  { %s49_s23 = sshll.u32 %s877_s22, 4  ;;  %s73_s4 = sshll.u32 %s878_s24, 4  ;;  %s50_s23 = int_to_ptr.vmem [resolvable:$true] %s49_s23  ;;  %s74_s4 = int_to_ptr.vmem [resolvable:$true] %s73_s4 }
  0x2e   :  { %s812_s25 = scalar_lea.vmem %s50_s23, 1024  ;;  %p817_p7 = scmp.lt.s32.totalorder %s50_s23, %s50_s23 }
  0x2f   :  { %p813_p6 = scmp.ne.s32.totalorder %s50_s23, %s812_s25  ;;  %p818_p8 = scmp.lt.s32.totalorder %s812_s25, %s812_s25 }
  0x31   :  { %p819_p9 = por %p818_p8, %p817_p7 }
  0x33   :  { %p820_p10 = pnand %p819_p9, %p813_p6 }
  0x35   :  { %823 = shalt.err (!%p820_p10)
}
  0x36   :  { %55 = dma.hbm_to_vmem [thread:$0]  %s962_s3, 1024, %s50_s23, [#allocation8], %s873_s11, %s873_s11, %s874_s12  }
  0x37   :  { %s832_s1 = scalar_lea.vmem %s74_s4, 1024  ;;  %p837_p12 = scmp.lt.s32.totalorder %s74_s4, %s74_s4 }
  0x38   :  { %p833_p11 = scmp.ne.s32.totalorder %s74_s4, %s832_s1  ;;  %p838_p13 = scmp.lt.s32.totalorder %s832_s1, %s832_s1 }
  0x3a   :  { %p839_p0 = por %p838_p13, %p837_p12 }
  0x3c   :  { %p840_p1 = pnand %p839_p0, %p833_p11 }
  0x3e   :  { %843 = shalt.err (!%p840_p1)
}
  0x3f   :  { %79 = dma.hbm_to_vmem [thread:$0]  %s964_s5, 1024, %s74_s4, [#allocation11], %s873_s11, %s873_s11, %s874_s12  }
  0x40   :  { %864 = dma.done.wait [#allocation5], 192  }
  0x41   :  { %865 = vsyncadd [#allocation5], 4294967104 }
  0x42   :  { %866 = dma.done.wait [#allocation8], 2048  }
  0x43   :  { %867 = vsyncadd [#allocation8], 4294965248 }
  0x44   :  { %868 = dma.done.wait [#allocation11], 1216  }
  0x45   :  { %869 = vsyncadd [#allocation11], 4294966080  ;;  %v714_v0 = vld [vmem:[#allocation9 + $0x38] sm:$0xff]   ;;  %v715_v1 = vld [vmem:[#allocation9 + $0x30] sm:$0xff]   ;;  %s879_s3 = smov [#allocation13]  }
  0x46   :  { %652 = vmatprep.subr.bf16.mxu1 %v714_v0  ;;  %v716_v2 = vld [vmem:[#allocation9 + $0x28] sm:$0xff]   ;;  %v717_v3 = vld [vmem:[#allocation9 + $0x20] sm:$0xff]   ;;  %v718_v5 = vld [vmem:[#allocation9 + $0x18] sm:$0xff]   ;;  %s549_s5 = sshll.u32 %s879_s3, 4  ;;  %s550_s5 = int_to_ptr.vmem [resolvable:$true] %s549_s5 }
  0x47   :  { %653 = vmatpush3.bf16.msra.mxu1 %v714_v0  ;;  %v722_v4 = vld [vmem:[#allocation7] sm:$0xff]   ;;  %v719_v6 = vld [vmem:[#allocation9 + $0x10] sm:$0xff]   ;;  %v720_v9 = vld [vmem:[#allocation9 + $0x8] sm:$0xff]   ;;  %s844_s30 = scalar_lea.vmem %s550_s5, 384  ;;  %p849_p3 = scmp.lt.s32.totalorder %s550_s5, %s550_s5 }
  0x48   :  { %654 = vmatprep.subr.bf16.mxu1 %v715_v1  ;;  %668 = vmatprep.mubr.bf16.mxu1 %v722_v4  ;;  %v730_v7 = vld [vmem:[#allocation12 + $0x38] sm:$0xff]   ;;  %v731_v8 = vld [vmem:[#allocation12 + $0x30] sm:$0xff]   ;;  %v724_v12 = vld [vmem:[#allocation7 + $0x10] sm:$0xff]   ;;  %p845_p2 = scmp.ne.s32.totalorder %s550_s5, %s844_s30  ;;  %p850_p4 = scmp.lt.s32.totalorder %s844_s30, %s844_s30 }
  0x49   :  { %632 = vmatprep.subr.bf16.mxu0 %v730_v7  ;;  %v721_v10 = vld [vmem:[#allocation9] sm:$0xff]   ;;  %v723_v11 = vld [vmem:[#allocation7 + $0x8] sm:$0xff]   ;;  %v725_v13 = vld [vmem:[#allocation7 + $0x18] sm:$0xff]  }
  0x4a   :  { %633 = vmatpush3.bf16.msra.mxu0 %v730_v7  ;;  %v726_v14 = vld [vmem:[#allocation7 + $0x20] sm:$0xff]   ;;  %v727_v15 = vld [vmem:[#allocation7 + $0x28] sm:$0xff]   ;;  %v728_v16 = vld [vmem:[#allocation7 + $0x30] sm:$0xff]   ;;  %p851_p5 = por %p850_p4, %p849_p3 }
  0x4b   :  { %655 = vmatpush3.bf16.msra.mxu1 %v715_v1  ;;  %634 = vmatprep.subr.bf16.mxu0 %v731_v8  ;;  %v729_v17 = vld [vmem:[#allocation7 + $0x38] sm:$0xff]   ;;  %v733_v19 = vld [vmem:[#allocation12 + $0x20] sm:$0xff]   ;;  %v734_v20 = vld [vmem:[#allocation12 + $0x18] sm:$0xff]  }
  0x4c   :  { %656 = vmatprep.subr.bf16.mxu1 %v716_v2  ;;  %v732_v18 = vld [vmem:[#allocation12 + $0x28] sm:$0xff]   ;;  %v735_v21 = vld [vmem:[#allocation12 + $0x10] sm:$0xff]   ;;  %v737_v23 = vld [vmem:[#allocation12] sm:$0xff]   ;;  %p852_p6 = pnand %p851_p5, %p845_p2 }
  0x4d   :  { %v736_v22 = vld [vmem:[#allocation12 + $0x8] sm:$0xff]   ;;  %v738_v24 = vld [vmem:[#allocation10] sm:$0xff]   ;;  %v739_v25 = vld [vmem:[#allocation10 + $0x8] ss:$0 sps:$4 sm:$0xff]  }
  0x4e   :  { %635 = vmatpush3.bf16.msra.mxu0 %v731_v8  ;;  %648 = vmatprep.mubr.bf16.mxu0 %v738_v24  ;;  %v740_v26 = vld [vmem:[#allocation4] sm:$0xff]   ;;  %v741_v51 = vld [vmem:[#allocation4 + $0x8] ss:$0 sps:$4 sm:$0xff]  }
  0x4f   :  { %657 = vmatpush3.bf16.msra.mxu1 %v716_v2  ;;  %636 = vmatprep.subr.bf16.mxu0 %v732_v18 }
  0x50   :  { %658 = vmatprep.subr.bf16.mxu1 %v717_v3 }
  0x52   :  { %637 = vmatpush3.bf16.msra.mxu0 %v732_v18 }
  0x53   :  { %659 = vmatpush3.bf16.msra.mxu1 %v717_v3  ;;  %638 = vmatprep.subr.bf16.mxu0 %v733_v19 }
  0x54   :  { %660 = vmatprep.subr.bf16.mxu1 %v718_v5 }
  0x56   :  { %639 = vmatpush3.bf16.msra.mxu0 %v733_v19 }
  0x57   :  { %661 = vmatpush3.bf16.msra.mxu1 %v718_v5  ;;  %640 = vmatprep.subr.bf16.mxu0 %v734_v20 }
  0x58   :  { %662 = vmatprep.subr.bf16.mxu1 %v719_v6 }
  0x5a   :  { %641 = vmatpush3.bf16.msra.mxu0 %v734_v20 }
  0x5b   :  { %663 = vmatpush3.bf16.msra.mxu1 %v719_v6  ;;  %642 = vmatprep.subr.bf16.mxu0 %v735_v21 }
  0x5c   :  { %664 = vmatprep.subr.bf16.mxu1 %v720_v9 }
  0x5e   :  { %643 = vmatpush3.bf16.msra.mxu0 %v735_v21 }
  0x5f   :  { %665 = vmatpush3.bf16.msra.mxu1 %v720_v9  ;;  %644 = vmatprep.subr.bf16.mxu0 %v736_v22 }
  0x60   :  { %666 = vmatprep.subr.bf16.mxu1 %v721_v10 }
  0x62   :  { %645 = vmatpush3.bf16.msra.mxu0 %v736_v22 }
  0x63   :  { %667 = vmatpush3.bf16.msra.mxu1 %v721_v10  ;;  %646 = vmatprep.subr.bf16.mxu0 %v737_v23 }
  0x66   :  { %669 = vmatmul.mubr.bf16.vlgmr.msra.gmra.mxu1 %v723_v11  ;;  %647 = vmatpush3.bf16.msra.mxu0 %v737_v23 }
  0x67   :  { %672 = vmatprep.mubr.bf16.mxu1 %v724_v12 }
  0x69   :  { %649 = vmatmul.mubr.bf16.vlgmr.msra.gmra.mxu0 %v739_v25 }
  0x6a   :  { %700 = vmatprep.mubr.bf16.mxu0 %v740_v26 }
  0x6e   :  { %673 = vmatmul.mubr.bf16.gmra.mxu1 %v725_v13 }
  0x6f   :  { %676 = vmatprep.mubr.bf16.mxu1 %v726_v14 }
  0x76   :  { %677 = vmatmul.mubr.bf16.gmra.mxu1 %v727_v15 }
  0x77   :  { %680 = vmatprep.mubr.bf16.mxu1 %v728_v16 }
  0x7e   :  { %681 = vmatmul.mubr.bf16.gmra.mxu1 %v729_v17 }
 0x126   :  { %v670_v27 = vpop.f32.mrf.mxu1 }
 0x128   :  { %v391_v28 = vpop.f32.mrf.mxu1 }
 0x129   :  { %v650_v52 = vpop.f32.mrf.mxu0 }
 0x12a   :  { %v671_v29 = vpop.f32.mrf.mxu1 }
 0x12b   :  { %v461_v49 = vpack.c.bf16 %v671_v29, %v670_v27  ;;  %v212_v53 = vpop.f32.mrf.mxu0 }
 0x12c   :  { %v394_v30 = vpop.f32.mrf.mxu1 }
 0x12d   :  { %v460_v50 = vpack.c.bf16 %v394_v30, %v391_v28  ;;  %v651_v54 = vpop.f32.mrf.mxu0 }
 0x12e   :  { %v674_v31 = vpop.f32.mrf.mxu1 }
 0x12f   :  { %v215_v55 = vpop.f32.mrf.mxu0 }
 0x130   :  { %v407_v32 = vpop.f32.mrf.mxu1 }
 0x132   :  { %v675_v33 = vpop.f32.mrf.mxu1 }
 0x133   :  { %v463_v47 = vpack.c.bf16 %v675_v33, %v674_v31 }
 0x134   :  { %v410_v34 = vpop.f32.mrf.mxu1 }
 0x135   :  { %v462_v48 = vpack.c.bf16 %v410_v34, %v407_v32 }
 0x136   :  { %v678_v35 = vpop.f32.mrf.mxu1 }
 0x138   :  { %v423_v36 = vpop.f32.mrf.mxu1 }
 0x13a   :  { %v679_v37 = vpop.f32.mrf.mxu1 }
 0x13b   :  { %v465_v45 = vpack.c.bf16 %v679_v37, %v678_v35 }
 0x13c   :  { %v426_v38 = vpop.f32.mrf.mxu1 }
 0x13d   :  { %v464_v46 = vpack.c.bf16 %v426_v38, %v423_v36 }
 0x13e   :  { %v682_v39 = vpop.f32.mrf.mxu1 }
 0x140   :  { %v439_v40 = vpop.f32.mrf.mxu1 }
 0x142   :  { %v683_v41 = vpop.f32.mrf.mxu1 }
 0x143   :  { %v467_v42 = vpack.c.bf16 %v683_v41, %v682_v39 }
 0x144   :  { %v442_v43 = vpop.f32.mrf.mxu1 }
 0x145   :  { %v466_v44 = vpack.c.bf16 %v442_v43, %v439_v40  ;;  %684 = vmatprep.subr.bf16.mxu0 %v467_v42 }
 0x146   :  { %685 = vmatpush3.bf16.msra.mxu0 %v467_v42 }
 0x147   :  { %686 = vmatprep.subr.bf16.mxu0 %v466_v44 }
 0x14a   :  { %687 = vmatpush3.bf16.msra.mxu0 %v466_v44 }
 0x14b   :  { %688 = vmatprep.subr.bf16.mxu0 %v465_v45 }
 0x14e   :  { %689 = vmatpush3.bf16.msra.mxu0 %v465_v45 }
 0x14f   :  { %690 = vmatprep.subr.bf16.mxu0 %v464_v46 }
 0x152   :  { %691 = vmatpush3.bf16.msra.mxu0 %v464_v46 }
 0x153   :  { %692 = vmatprep.subr.bf16.mxu0 %v463_v47 }
 0x156   :  { %693 = vmatpush3.bf16.msra.mxu0 %v463_v47 }
 0x157   :  { %694 = vmatprep.subr.bf16.mxu0 %v462_v48 }
 0x15a   :  { %695 = vmatpush3.bf16.msra.mxu0 %v462_v48 }
 0x15b   :  { %696 = vmatprep.subr.bf16.mxu0 %v461_v49 }
 0x15e   :  { %697 = vmatpush3.bf16.msra.mxu0 %v461_v49 }
 0x15f   :  { %698 = vmatprep.subr.bf16.mxu0 %v460_v50 }
 0x162   :  { %699 = vmatpush3.bf16.msra.mxu0 %v460_v50 }
 0x165   :  { %701 = vmatmul.mubr.bf16.vlgmr.msra.gmra.mxu0 %v741_v51 }
 0x225   :  { %v702_v56 = vpop.f32.mrf.mxu0 }
 0x226   :  { %v528_v57 = vadd.f32 %v702_v56, %v650_v52 }
 0x227   :  { %v512_v58 = vpop.f32.mrf.mxu0 }
 0x228   :  { %v540_v59 = vmax.f32 %v528_v57, 0.0  ;;  %v526_v60 = vadd.f32 %v512_v58, %v212_v53 }
 0x229   :  { %v703_v61 = vpop.f32.mrf.mxu0 }
 0x22a   :  { %543 = vst [vmem:[#allocation13 + $0x10] sm:$0xff] %v540_v59  ;;  %v538_v62 = vmax.f32 %v526_v60, 0.0 }
 0x22b   :  { %v515_v63 = vpop.f32.mrf.mxu0 }
 0x22c   :  { %541 = vst [vmem:[#allocation13] sm:$0xff] %v538_v62  ;;  %v527_v0 = vadd.f32 %v515_v63, %v215_v55 }
 0x22e   :  { %v539_v1 = vmax.f32 %v527_v0, 0.0 }
 0x230   :  { %542 = vst [vmem:[#allocation13 + $0x8] sm:$0xff] %v539_v1 }
 0x231   :  { %855 = shalt.err (!%p852_p6)
}
 0x232   :  { %s880_s7 = smov 128   ;;  %s881_s8 = smov 8  }
 0x233   :  { %555 = dma.vmem_to_hbm [thread:$0]  %s550_s5, 384, %s965_s6, [#allocation6], %s880_s7, %s880_s7, %s881_s8  }
 0x234   :  { %870 = dma.done.wait [#allocation6], 384  }
 0x235   :  { %871 = vsyncadd [#allocation6], 4294966912 }
 0x236   :  { %559 = vsyncpa [#allocation5], 1 }
 0x237   :  { %560 = vsyncpa [#allocation8], 1 }
 0x238   :  { %561 = vsyncpa [#allocation11], 1 }
 0x239   :  { %562 = vsyncpa [#allocation6], 1 }

</bundles_post_ra>
